<compile_context>
chip_gen: v7x
topology: tpu7x:2x2x1
jax: 0.10.0
libtpu: 0.0.40
codegen_flags: <defaults>
</compile_context>

<pallas_src>
import functools

import jax
import jax.numpy as jnp
from jax.experimental import pallas as pl
from jax.experimental.pallas import tpu as pltpu


# ----------------------------------------------------------------------------
# Pallas kernel: fused 1x1-conv (as matmul) + bias + ReLU, lane = spatial dim
# ----------------------------------------------------------------------------
def _conv1x1_relu_kernel(x_ref, w_ref, b_ref, o_ref):
    # x_ref: (Cin, tl)   w_ref: (Cout, Cin)   b_ref: (Cout, 1)   o_ref: (Cout, tl)
    acc = jnp.dot(w_ref[...], x_ref[...], preferred_element_type=jnp.float32)
    acc = acc + b_ref[...]                     # f32 bias add
    o_ref[...] = jnp.maximum(acc, 0.0).astype(o_ref.dtype)


def _round_up(x, m):
    return ((x + m - 1) // m) * m


def conv1x1_relu_nchw(x, weight, bias, *, max_tl=2048, use_bf16=False):
    """1x1 conv + bias + ReLU on an NCHW tensor via Pallas.

    x:      (N, Cin, H, W)
    weight: (Cout, Cin, 1, 1)   (PyTorch conv weight layout)
    bias:   (Cout,)
    returns (N, Cout, H, W) float32
    """
    N, Cin, H, W = x.shape
    Cout = weight.shape[0]
    HW = H * W

    x3 = x.reshape(N, Cin, HW)            # free reshape, NCHW preserved
    w2 = weight.reshape(Cout, Cin)
    b2 = bias.reshape(Cout, 1).astype(jnp.float32)

    if use_bf16:
        x3 = x3.astype(jnp.bfloat16)
        w2 = w2.astype(jnp.bfloat16)

    in_bytes = jnp.dtype(x3.dtype).itemsize
    out_bytes = 4  # f32 output

    # Lane tile over the spatial dim.  Keep the double-buffered working set
    # (input + output tiles) under ~12 MiB so it fits every generation's
    # default scoped VMEM (v5e 16 MiB, v6e/v7x 32 MiB) without flags.
    bytes_per_lane = 2 * (Cin * in_bytes + Cout * out_bytes)
    vmem_budget = 12 * 1024 * 1024
    tl_cap = max(128, min(max_tl, (vmem_budget // bytes_per_lane) // 128 * 128))
    if HW <= tl_cap:
        tl = HW                 # full spatial extent: always a legal block
    else:
        tl = tl_cap             # multiple of 128; ragged last block is masked

    grid = (N, pl.cdiv(HW, tl))

    y3 = pl.pallas_call(
        _conv1x1_relu_kernel,
        out_shape=jax.ShapeDtypeStruct((N, Cout, HW), jnp.float32),
        grid_spec=pltpu.PrefetchScalarGridSpec(
            num_scalar_prefetch=0,
            grid=grid,
            in_specs=[
                # batch dim squeezed out; lane dim is the spatial tile
                pl.BlockSpec((None, Cin, tl), lambda n, j: (n, 0, j)),
                pl.BlockSpec((Cout, Cin), lambda n, j: (0, 0)),
                pl.BlockSpec((Cout, 1), lambda n, j: (0, 0)),
            ],
            out_specs=pl.BlockSpec((None, Cout, tl), lambda n, j: (n, 0, j)),
        ),
        compiler_params=pltpu.CompilerParams(
            dimension_semantics=("parallel", "parallel")),
    )(x3, w2, b2)

    return y3.reshape(N, Cout, H, W)


# ----------------------------------------------------------------------------
# Plain-JAX glue for the optional resampling pre-steps (NCHW)
# ----------------------------------------------------------------------------
def _max_pool2d_2x2(x):
    # x: (N, C, H, W) -> (N, C, H//2, W//2), kernel=2, stride=2 (floor mode)
    N, C, H, W = x.shape
    H2, W2 = H // 2, W // 2
    x = x[:, :, : 2 * H2, : 2 * W2]
    x = x.reshape(N, C, H2, 2, W2, 2)
    return jnp.max(x, axis=(3, 5))


def _bilinear_upsample_2x(x):
    # Matches torch.nn.functional.interpolate(scale_factor=2, mode='bilinear',
    # align_corners=False): src = (dst + 0.5) / 2 - 0.5, clamped.
    N, C, H, W = x.shape
    Ho, Wo = 2 * H, 2 * W

    def src_coords(out_size, in_size):
        d = jnp.arange(out_size, dtype=jnp.float32)
        s = (d + 0.5) / 2.0 - 0.5
        s = jnp.clip(s, 0.0, in_size - 1.0)
        lo = jnp.floor(s).astype(jnp.int32)
        hi = jnp.minimum(lo + 1, in_size - 1)
        frac = s - lo.astype(jnp.float32)
        return lo, hi, frac

    hy0, hy1, fy = src_coords(Ho, H)
    wx0, wx1, fx = src_coords(Wo, W)

    top = x[:, :, hy0, :]
    bot = x[:, :, hy1, :]
    rows = top * (1.0 - fy)[None, None, :, None] + bot * fy[None, None, :, None]
    left = rows[:, :, :, wx0]
    right = rows[:, :, :, wx1]
    return left * (1.0 - fx)[None, None, None, :] + right * fx[None, None, None, :]


# ----------------------------------------------------------------------------
# The module, JAX-side
# ----------------------------------------------------------------------------
class Bottleneck:
    def __init__(self, in_channels, bottleneck_channels=16,
                 upsample=False, downsample=False, use_bf16=False, key=None):
        self.upsample = upsample
        self.downsample = downsample
        self.use_bf16 = use_bf16
        if key is None:
            key = jax.random.PRNGKey(42)
        kw, kb = jax.random.split(key)
        # Deterministic synthetic init matching nn.Conv2d(in, out, 1) shapes:
        #   weight: (Cout, Cin, 1, 1), bias: (Cout,)
        bound = 1.0 / jnp.sqrt(jnp.float32(in_channels))
        self.weight = jax.random.uniform(
            kw, (bottleneck_channels, in_channels, 1, 1),
            minval=-bound, maxval=bound, dtype=jnp.float32)
        self.bias = jax.random.uniform(
            kb, (bottleneck_channels,),
            minval=-bound, maxval=bound, dtype=jnp.float32)

    @functools.partial(jax.jit, static_argnums=0)
    def __call__(self, x):
        # x: (N, C, H, W) float32
        if self.downsample:
            # TODO(synk): fuse the 2x2 max-pool into the Pallas in_spec.
            x = _max_pool2d_2x2(x)
        elif self.upsample:
            x = _bilinear_upsample_2x(x)
        return conv1x1_relu_nchw(x, self.weight, self.bias,
                                 use_bf16=self.use_bf16)


# ----------------------------------------------------------------------------
if __name__ == "__main__":
    key = jax.random.PRNGKey(0)
    N, C, H, W = 2, 4, 16, 16
    Cout = 16
    x = jax.random.normal(key, (N, C, H, W), dtype=jnp.float32)

    def conv_ref(xin, mod):
        w2 = mod.weight.reshape(Cout, C)
        r = jnp.einsum("nchw,oc->nohw", xin, w2) + mod.bias[None, :, None, None]
        return jnp.maximum(r, 0.0)

    # 1) default path (no resampling), exact f32
    mod = Bottleneck(in_channels=C, bottleneck_channels=Cout)
    y = jax.block_until_ready(mod(x))
    ref = conv_ref(x, mod)
    assert y.shape == (N, Cout, H, W), y.shape
    assert jnp.allclose(y, ref, atol=1e-5, rtol=1e-5)

    # 2) downsample path
    mod_ds = Bottleneck(in_channels=C, bottleneck_channels=Cout, downsample=True)
    y_ds = jax.block_until_ready(mod_ds(x))
    x_pool = jax.lax.reduce_window(x, -jnp.inf, jax.lax.max,
                                   (1, 1, 2, 2), (1, 1, 2, 2), 'VALID')
    ref_ds = conv_ref(x_pool, mod_ds)
    assert y_ds.shape == (N, Cout, H // 2, W // 2), y_ds.shape
    assert jnp.allclose(y_ds, ref_ds, atol=1e-5, rtol=1e-5)

    # 3) upsample path (reference uses the same interpolation glue; this
    #    validates the Pallas kernel at the upsampled shape)
    mod_us = Bottleneck(in_channels=C, bottleneck_channels=Cout, upsample=True)
    y_us = jax.block_until_ready(mod_us(x))
    ref_us = conv_ref(_bilinear_upsample_2x(x), mod_us)
    assert y_us.shape == (N, Cout, 2 * H, 2 * W), y_us.shape
    assert jnp.allclose(y_us, ref_us, atol=1e-5, rtol=1e-5)

    # 4) optional bf16-input path (f32 accumulate), relaxed tolerance
    mod_bf = Bottleneck(in_channels=C, bottleneck_channels=Cout, use_bf16=True)
    y_bf = jax.block_until_ready(mod_bf(x))
    ref_bf = conv_ref(x, mod_bf)
    assert jnp.allclose(y_bf, ref_bf, atol=3e-2, rtol=3e-2)

    print("KERNEL_OK")
</pallas_src>

<mosaic_0001>
module attributes {stable_mosaic.version = 11 : i64} {
  func.func @_conv1x1_relu_kernel(%arg0: i32, %arg1: i32, %arg2: memref<1x4x256xf32, #tpu.memory_space<vmem>>, %arg3: memref<16x4xf32, #tpu.memory_space<vmem>>, %arg4: memref<16x1xf32, #tpu.memory_space<vmem>>, %arg5: memref<1x16x256xf32, #tpu.memory_space<vmem>>) attributes {dimension_semantics = [#tpu.dimension_semantics<parallel>, #tpu.dimension_semantics<parallel>], iteration_bounds = array<i64: 2, 1>, scalar_prefetch = 0 : i64, scratch_operands = 0 : i64, tpu.core_type = #tpu.core_type<tc>, window_params = [{transform_indices = @transform_0, window_bounds = array<i64: 1, 4, 256>}, {pipeline_mode = #tpu.pipeline_mode<synchronous>, transform_indices = @transform_1, window_bounds = array<i64: 16, 4>}, {pipeline_mode = #tpu.pipeline_mode<synchronous>, transform_indices = @transform_2, window_bounds = array<i64: 16, 1>}, {transform_indices = @transform_3, window_bounds = array<i64: 1, 16, 256>}]} {
    %c0 = arith.constant 0 : index
    %c0_0 = arith.constant 0 : index
    %0 = vector.load %arg3[%c0, %c0_0] : memref<16x4xf32, #tpu.memory_space<vmem>>, vector<16x4xf32>
    %c0_1 = arith.constant 0 : index
    %c0_2 = arith.constant 0 : index
    %c0_3 = arith.constant 0 : index
    %1 = vector.load %arg2[%c0_1, %c0_2, %c0_3] : memref<1x4x256xf32, #tpu.memory_space<vmem>>, vector<1x4x256xf32>
    %2 = vector.shape_cast %1 : vector<1x4x256xf32> to vector<4x256xf32>
    %cst = arith.constant dense<0.000000e+00> : vector<16x256xf32>
    %3 = tpu.matmul %0, %2, %cst {dimension_numbers = #tpu.dot_dimension_numbers<[1], [0], [0], [1], [0, 0, 1, 1], [], []>} : vector<16x4xf32>, vector<4x256xf32>, vector<16x256xf32> -> vector<16x256xf32>
    %c0_4 = arith.constant 0 : index
    %c0_5 = arith.constant 0 : index
    %4 = vector.load %arg4[%c0_4, %c0_5] : memref<16x1xf32, #tpu.memory_space<vmem>>, vector<16x1xf32>
    %5 = vector.broadcast %4 : vector<16x1xf32> to vector<16x256xf32>
    %6 = arith.addf %3, %5 : vector<16x256xf32>
    %cst_6 = arith.constant 0.000000e+00 : f32
    %7 = vector.broadcast %cst_6 : f32 to vector<16x256xf32>
    %8 = arith.maximumf %6, %7 : vector<16x256xf32>
    %c0_7 = arith.constant 0 : index
    %c0_8 = arith.constant 0 : index
    %c0_9 = arith.constant 0 : index
    %9 = vector.load %arg5[%c0_7, %c0_8, %c0_9] : memref<1x16x256xf32, #tpu.memory_space<vmem>>, vector<1x16x256xf32>
    %10 = vector.shape_cast %9 : vector<1x16x256xf32> to vector<16x256xf32>
    %11 = vector.shape_cast %8 : vector<16x256xf32> to vector<1x16x256xf32>
    tpu.vector_store %arg5[%c0_7, %c0_8, %c0_9], %11 {strides = array<i32>} : memref<1x16x256xf32, #tpu.memory_space<vmem>>, vector<1x16x256xf32>,
    return
  }
  func.func @transform_0(%arg0: i32, %arg1: i32) -> (i32, i32, i32) {
    %c0_i32 = arith.constant 0 : i32
    %c0_i32_0 = arith.constant 0 : i32
    return %arg0, %c0_i32, %arg1 : i32, i32, i32
  }
  func.func @transform_1(%arg0: i32, %arg1: i32) -> (i32, i32) {
    %c0_i32 = arith.constant 0 : i32
    %c0_i32_0 = arith.constant 0 : i32
    %c0_i32_1 = arith.constant 0 : i32
    return %c0_i32, %c0_i32_0 : i32, i32
  }
  func.func @transform_2(%arg0: i32, %arg1: i32) -> (i32, i32) {
    %c0_i32 = arith.constant 0 : i32
    %c0_i32_0 = arith.constant 0 : i32
    %c0_i32_1 = arith.constant 0 : i32
    return %c0_i32, %c0_i32_0 : i32, i32
  }
  func.func @transform_3(%arg0: i32, %arg1: i32) -> (i32, i32, i32) {
    %c0_i32 = arith.constant 0 : i32
    %c0_i32_0 = arith.constant 0 : i32
    return %arg0, %c0_i32, %arg1 : i32, i32, i32
  }
}

</mosaic_0001>

<bundles_post_ra>
// kernel: a_call__.1
= control target key start
LH: loop header
LB: loop body
LE: loop exit
PB: predicated region body
PF: predicated region fallthrough
CT: control target
= control target key end

     0   :  { %s504_s12 = smov 0   ;;  %s506_s13 = smov 0   ;;  %s553_s0 = inlined_call_operand.vmem [shape: f32[2,4,256], index: 0, kind: input, shape index: {}]   ;;  %s554_s1 = inlined_call_operand.vmem [shape: f32[16,4], index: 1, kind: input, shape index: {}]   ;;  %s555_s2 = inlined_call_operand.vmem [shape: f32[16,1], index: 2, kind: input, shape index: {}]   ;;  %s556_s3 = inlined_call_operand.vmem [shape: f32[2,16,256], index: 3, kind: output, shape index: {}]  }
   0x1   :  { %s508_s14 = smov 0  }
   0x2 LB: > { %s25_s15 = sadd.s32 1, %s476_s13  ;;  %p415_p0 = scmp.ge.s32.totalorder %s480_s14, 1  ;;  %s480_s14 = sphi %s508_s14, %s13_s14   ;;  %s476_s13 = sphi %s506_s13, %s558_s13   ;;  %s472_s12 = sphi %s504_s12, %s557_s12  }
   0x3   : > { %p27_p1 = scmp.ge.s32.totalorder %s25_s15, 2  ;;  %p158_p2 = scmp.lt.s32.totalorder %s480_s14, 3 }
   0x5   : > { %s560_s15 = smov (%p27_p1, %s25_s15), 0  ;;  %p159_p3 = pnand %p415_p0, %p158_p2 }
   0x6   : > { %p191_p4 = scmp.lt.s32.totalorder (!%p159_p3), %s472_s12, 1  ;;  %v482_v0 = vmov (!%p159_p3), 0.0   ;;  %v213_v1 = vld [vmem:[%s555_s2] sm:$0xff] (!%p159_p3)  ;;  %v483_v2 = vmov (!%p159_p3), 0   ;;  %v214_v3 = vld [vmem:[%s555_s2 + $0x8] sm:$0xff] (!%p159_p3)  ;;  %vm234_vm0 = vcmask (!%p159_p3), 1043456  }
   0x7   : > { %162 = sbr.rel (%p159_p3) target bundleno = 240 (0xf0), region = 32  ;;  %303 = vmatprep.mubr.f32.mxu0 (!%p159_p3), %v482_v0  ;;  %309 = vmatprep.mubr.f32.mxu1 (!%p159_p3), %v482_v0  ;;  %v210_v6 = vld [vmem:[%s554_s1] sm:$0xff] (!%p159_p3)  ;;  %vm227_vm1 = vcmask (!%p159_p3), 31744   ;;  %v211_v7 = vld [vmem:[%s554_s1 + $0x8] sm:$0xff] (!%p159_p3) }
   0x8   : > { %456 = vset.pattern.permute.xlu0 (!%p159_p3), %v483_v2 }
   0x9   : > { %217 = vperm.xlu0 (!%p159_p3), %456, %v213_v1  }
   0xd   : > { %222 = vperm.xlu0 (!%p159_p3), %456, %v214_v3  }
   0xe   : > { %s562_s12 = smov (!%p191_p4, %s472_s12), 1 }
   0xf   : > { %s426_s18 = sshll.u32 %s562_s12, 3  ;;  %s427_s28 = sshll.u32 %s562_s12, 5 }
  0x10   : > { %s198_s23 = scalar_lea.vmem %s553_s0, %s426_s18  ;;  %s208_s4 = scalar_lea.vmem %s556_s3, %s427_s28 }
  0x11   : > { %v212_v4 = vld [vmem:[%s198_s23] sm:$0xff] }
  0x12   : > { %v226_v5 = vcombine.high %v212_v4, %v212_v4 }
  0x14   : > { %420 = vmatprep.subr.msk.mxu0 %vm234_vm0, %v226_v5  ;;  %428 = vmatprep.subr.msk.mxu1 %vm234_vm0, %v226_v5 }
  0x15   : > { %421 = vmatpush1.msk.msra.mxu0 %vm234_vm0, %v212_v4  ;;  %429 = vmatpush1.msk.msra.mxu1 %vm234_vm0, %v212_v4 }
  0x16   : > { %422 = vmatmul.mubr.msk.f32.vlgmr.msra.gmra.mrb[0].mxu0 %vm227_vm1, %v210_v6  ;;  %423 = vmatmul.mubr.msk.f32.vlgmr.msra.gmra.mrb[0].mxu1 %vm227_vm1, %v211_v7 }
  0x88   : > { %v218_v8 = vpop.permute.xlu0 %217 }
  0x8c   : > { %v223_v9 = vpop.permute.xlu0 %222 }
  0xe9   : > { %v305_v10 = vpop.f32.mrb[0].mxu0  ;;  %v311_v11 = vpop.f32.mrb[0].mxu1 }
  0xea   : > { %v306_v12 = vadd.f32 %v305_v10, %v218_v8  ;;  %v312_v13 = vadd.f32 %v311_v11, %v223_v9  ;;  %v307_v14 = vpop.f32.mrb[1].mxu0  ;;  %v313_v15 = vpop.f32.mrb[1].mxu1 }
  0xeb   : > { %v308_v16 = vadd.f32 %v307_v14, %v218_v8  ;;  %v314_v17 = vadd.f32 %v313_v15, %v223_v9 }
  0xec   : > { %v316_v18 = vmax.f32 %v306_v12, 0.0  ;;  %v318_v19 = vmax.f32 %v312_v13, 0.0 }
  0xed   : > { %v317_v20 = vmax.f32 %v308_v16, 0.0  ;;  %v319_v21 = vmax.f32 %v314_v17, 0.0 }
  0xee   : > { %320 = vst [vmem:[%s208_s4] sm:$0xff] %v316_v18  ;;  %322 = vst [vmem:[%s208_s4 + $0x10] sm:$0xff] %v318_v19 }
  0xef   : > { %321 = vst [vmem:[%s208_s4 + $0x8] sm:$0xff] %v317_v20  ;;  %323 = vst [vmem:[%s208_s4 + $0x18] sm:$0xff] %v319_v21 }
  0xf0 PF: > { %s13_s14 = sadd.s32 1, %s480_s14   ;;  %s557_s12 = smov %s476_s13 }
  0xf1   : > { %p10_p5 = scmp.ge.s32.totalorder %s13_s14, 4   ;;  %s558_s13 = smov %s560_s15 }
  0xf3   :  { %12 = sbr.rel (!%p10_p5) target bundleno = 2 (0x2), region = 62 }

</bundles_post_ra>
